<compile_context>
chip_gen: v6e
topology: v6e:2x2x1
jax: 0.10.0
libtpu: 0.0.40
codegen_flags: <defaults>
</compile_context>

<pallas_src>
import jax
import jax.numpy as jnp
from jax.experimental import pallas as pl
from jax.experimental.pallas import tpu as pltpu

HIDDEN = 128
LANE = 128


def _round_up(n: int, m: int) -> int:
    return (n + m - 1) // m * m


def _mlp_kernel(x_ref, w1_ref, b1_ref, w2_ref, b2_ref, out_ref):
    # x: (TB, S) compute_dtype | w1: (S, H) compute_dtype | b1: (1, H) f32
    # w2: (H, Np) compute_dtype | b2: (1, Np) f32 | out: (TB, Np) f32
    x = x_ref[...]
    h = jnp.dot(x, w1_ref[...], preferred_element_type=jnp.float32)   # MXU, f32 acc
    h = jnp.maximum(h + b1_ref[...], 0.0)                             # bias+ReLU in f32 (VPU)
    y = jnp.dot(h.astype(w2_ref.dtype), w2_ref[...],
                preferred_element_type=jnp.float32)                   # MXU, f32 acc
    out_ref[...] = (y + b2_ref[...]).astype(out_ref.dtype)            # lane-dense store


def network_forward(x, w1, b1, w2, b2, *, block_b: int = 512,
                    compute_dtype=jnp.bfloat16):
    """Pallas forward pass equivalent to Network.forward.

    x:  (B, state_dim) f32
    w1: (state_dim, 128) f32   (transpose of PyTorch linear.weight)
    b1: (128,) f32
    w2: (128, action_dim) f32  (transpose of PyTorch out.weight)
    b2: (action_dim,) f32
    returns: (B, action_dim) f32
    """
    B, S = x.shape
    assert w1.shape[0] == S and w1.shape[1] == HIDDEN
    H = HIDDEN
    A = w2.shape[1]

    # --- lane-dense second GEMM: pad N from A to a multiple of 128 (zeros) ---
    n_pad = _round_up(max(A, 1), LANE)
    w2_p = jnp.zeros((H, n_pad), w2.dtype).at[:, :A].set(w2)
    b2_p = jnp.zeros((1, n_pad), jnp.float32).at[0, :A].set(b2.astype(jnp.float32))
    b1_2d = b1.reshape(1, H).astype(jnp.float32)

    # --- batch tiling: TB rows per grid step, pad batch to a tile multiple ---
    TB = min(block_b, _round_up(B, 8))
    B_pad = _round_up(B, TB)
    if B_pad != B:
        x = jnp.pad(x, ((0, B_pad - B), (0, 0)))

    # bf16 inputs halve the x DMA bytes and hit the bf16-native MXU; accumulation
    # stays f32.  Use compute_dtype=jnp.float32 on v5e / for exact parity.
    x_c = x.astype(compute_dtype)
    w1_c = w1.astype(compute_dtype)
    w2_c = w2_p.astype(compute_dtype)

    grid = (B_pad // TB,)

    flops = 2 * B_pad * S * H + 2 * B_pad * H * n_pad
    bytes_accessed = int(
        x_c.size * x_c.dtype.itemsize
        + w1_c.size * w1_c.dtype.itemsize
        + w2_c.size * w2_c.dtype.itemsize
        + b1_2d.size * 4 + b2_p.size * 4
        + B_pad * n_pad * 4)

    out = pl.pallas_call(
        _mlp_kernel,
        out_shape=jax.ShapeDtypeStruct((B_pad, n_pad), jnp.float32),
        grid=grid,
        in_specs=[
            pl.BlockSpec((TB, S), lambda i: (i, 0)),     # x: tiled along batch
            pl.BlockSpec((S, H), lambda i: (0, 0)),      # w1: resident
            pl.BlockSpec((1, H), lambda i: (0, 0)),      # b1: resident
            pl.BlockSpec((H, n_pad), lambda i: (0, 0)),  # w2 (padded): resident
            pl.BlockSpec((1, n_pad), lambda i: (0, 0)),  # b2 (padded): resident
        ],
        out_specs=pl.BlockSpec((TB, n_pad), lambda i: (i, 0)),
        compiler_params=pltpu.CompilerParams(
            dimension_semantics=("parallel",)),          # megacore on v7x
        cost_estimate=pl.CostEstimate(
            flops=flops, transcendentals=0, bytes_accessed=bytes_accessed),
    )(x_c, w1_c, b1_2d, w2_c, b2_p)

    # Drop batch padding and the zero-padded action columns.
    return out[:B, :A]


def init_params(key, state_dim, action_dim, hidden=HIDDEN):
    """Mimic PyTorch nn.Linear default init: U(-1/sqrt(fan_in), 1/sqrt(fan_in))."""
    k1, k2, k3, k4 = jax.random.split(key, 4)
    bound1 = 1.0 / jnp.sqrt(jnp.float32(state_dim))
    bound2 = 1.0 / jnp.sqrt(jnp.float32(hidden))
    w1 = jax.random.uniform(k1, (state_dim, hidden), jnp.float32, -bound1, bound1)
    b1 = jax.random.uniform(k2, (hidden,), jnp.float32, -bound1, bound1)
    w2 = jax.random.uniform(k3, (hidden, action_dim), jnp.float32, -bound2, bound2)
    b2 = jax.random.uniform(k4, (action_dim,), jnp.float32, -bound2, bound2)
    return w1, b1, w2, b2


if __name__ == "__main__":
    # LunarLander-v2: state_dim=8, action_dim=4.
    # batch=600 exercises the batch grid (2 tiles of 512) and remainder padding.
    state_dim, action_dim, batch = 8, 4, 600

    key = jax.random.PRNGKey(0)
    kx, kp = jax.random.split(key)
    x = jax.random.normal(kx, (batch, state_dim), dtype=jnp.float32)
    w1, b1, w2, b2 = init_params(kp, state_dim, action_dim)

    # Plain-JAX reference (same math as the PyTorch module, f32).
    ref_f32 = jnp.maximum(x @ w1 + b1, 0.0) @ w2 + b2

    # 1) f32 compute path: exact-parity check.
    out_f32 = jax.block_until_ready(
        network_forward(x, w1, b1, w2, b2, compute_dtype=jnp.float32))
    assert out_f32.shape == (batch, action_dim)
    assert jnp.allclose(out_f32, ref_f32, atol=1e-5, rtol=1e-5)

    # 2) Default bf16 MXU path (v6e/v7x fast path): loose tolerance vs f32 ref.
    out_bf16 = jax.block_until_ready(network_forward(x, w1, b1, w2, b2))
    assert out_bf16.shape == (batch, action_dim)
    assert jnp.allclose(out_bf16, ref_f32, atol=5e-2, rtol=5e-2)

    print("KERNEL_OK")
</pallas_src>

<mosaic_0001>
module attributes {stable_mosaic.version = 11 : i64} {
  func.func @_mlp_kernel(%arg0: i32, %arg1: memref<512x8xf32, #tpu.memory_space<vmem>>, %arg2: memref<8x128xf32, #tpu.memory_space<vmem>>, %arg3: memref<1x128xf32, #tpu.memory_space<vmem>>, %arg4: memref<128x128xf32, #tpu.memory_space<vmem>>, %arg5: memref<1x128xf32, #tpu.memory_space<vmem>>, %arg6: memref<512x128xf32, #tpu.memory_space<vmem>>) attributes {dimension_semantics = [#tpu.dimension_semantics<parallel>], iteration_bounds = array<i64: 2>, scalar_prefetch = 0 : i64, scratch_operands = 0 : i64, tpu.core_type = #tpu.core_type<tc>, window_params = [{transform_indices = @transform_0, window_bounds = array<i64: 512, 8>}, {pipeline_mode = #tpu.pipeline_mode<synchronous>, transform_indices = @transform_1, window_bounds = array<i64: 8, 128>}, {pipeline_mode = #tpu.pipeline_mode<synchronous>, transform_indices = @transform_2, window_bounds = array<i64: 1, 128>}, {pipeline_mode = #tpu.pipeline_mode<synchronous>, transform_indices = @transform_3, window_bounds = array<i64: 128, 128>}, {pipeline_mode = #tpu.pipeline_mode<synchronous>, transform_indices = @transform_4, window_bounds = array<i64: 1, 128>}, {transform_indices = @transform_5, window_bounds = array<i64: 512, 128>}]} {
    %c0 = arith.constant 0 : index
    %c0_0 = arith.constant 0 : index
    %0 = vector.load %arg1[%c0, %c0_0] : memref<512x8xf32, #tpu.memory_space<vmem>>, vector<512x8xf32>
    %c0_1 = arith.constant 0 : index
    %c0_2 = arith.constant 0 : index
    %1 = vector.load %arg2[%c0_1, %c0_2] : memref<8x128xf32, #tpu.memory_space<vmem>>, vector<8x128xf32>
    %cst = arith.constant dense<0.000000e+00> : vector<512x128xf32>
    %2 = tpu.matmul %0, %1, %cst {dimension_numbers = #tpu.dot_dimension_numbers<[1], [0], [0], [1], [0, 0, 1, 1], [], []>} : vector<512x8xf32>, vector<8x128xf32>, vector<512x128xf32> -> vector<512x128xf32>
    %c0_3 = arith.constant 0 : index
    %c0_4 = arith.constant 0 : index
    %3 = vector.load %arg3[%c0_3, %c0_4] : memref<1x128xf32, #tpu.memory_space<vmem>>, vector<1x128xf32>
    %4 = vector.broadcast %3 : vector<1x128xf32> to vector<512x128xf32>
    %5 = arith.addf %2, %4 : vector<512x128xf32>
    %cst_5 = arith.constant 0.000000e+00 : f32
    %6 = vector.broadcast %cst_5 : f32 to vector<512x128xf32>
    %7 = arith.maximumf %5, %6 : vector<512x128xf32>
    %c0_6 = arith.constant 0 : index
    %c0_7 = arith.constant 0 : index
    %8 = vector.load %arg4[%c0_6, %c0_7] : memref<128x128xf32, #tpu.memory_space<vmem>>, vector<128x128xf32>
    %cst_8 = arith.constant dense<0.000000e+00> : vector<512x128xf32>
    %9 = tpu.matmul %7, %8, %cst_8 {dimension_numbers = #tpu.dot_dimension_numbers<[1], [0], [0], [1], [0, 0, 1, 1], [], []>} : vector<512x128xf32>, vector<128x128xf32>, vector<512x128xf32> -> vector<512x128xf32>
    %c0_9 = arith.constant 0 : index
    %c0_10 = arith.constant 0 : index
    %10 = vector.load %arg5[%c0_9, %c0_10] : memref<1x128xf32, #tpu.memory_space<vmem>>, vector<1x128xf32>
    %11 = vector.broadcast %10 : vector<1x128xf32> to vector<512x128xf32>
    %12 = arith.addf %9, %11 : vector<512x128xf32>
    %c0_11 = arith.constant 0 : index
    %c0_12 = arith.constant 0 : index
    %13 = vector.load %arg6[%c0_11, %c0_12] : memref<512x128xf32, #tpu.memory_space<vmem>>, vector<512x128xf32>
    tpu.vector_store %arg6[%c0_11, %c0_12], %12 {strides = array<i32>} : memref<512x128xf32, #tpu.memory_space<vmem>>, vector<512x128xf32>,
    return
  }
  func.func @transform_0(%arg0: i32) -> (i32, i32) {
    %c0_i32 = arith.constant 0 : i32
    %c0_i32_0 = arith.constant 0 : i32
    return %arg0, %c0_i32 : i32, i32
  }
  func.func @transform_1(%arg0: i32) -> (i32, i32) {
    %c0_i32 = arith.constant 0 : i32
    %c0_i32_0 = arith.constant 0 : i32
    %c0_i32_1 = arith.constant 0 : i32
    return %c0_i32, %c0_i32_0 : i32, i32
  }
  func.func @transform_2(%arg0: i32) -> (i32, i32) {
    %c0_i32 = arith.constant 0 : i32
    %c0_i32_0 = arith.constant 0 : i32
    %c0_i32_1 = arith.constant 0 : i32
    return %c0_i32, %c0_i32_0 : i32, i32
  }
  func.func @transform_3(%arg0: i32) -> (i32, i32) {
    %c0_i32 = arith.constant 0 : i32
    %c0_i32_0 = arith.constant 0 : i32
    %c0_i32_1 = arith.constant 0 : i32
    return %c0_i32, %c0_i32_0 : i32, i32
  }
  func.func @transform_4(%arg0: i32) -> (i32, i32) {
    %c0_i32 = arith.constant 0 : i32
    %c0_i32_0 = arith.constant 0 : i32
    %c0_i32_1 = arith.constant 0 : i32
    return %c0_i32, %c0_i32_0 : i32, i32
  }
  func.func @transform_5(%arg0: i32) -> (i32, i32) {
    %c0_i32 = arith.constant 0 : i32
    %c0_i32_0 = arith.constant 0 : i32
    return %arg0, %c0_i32 : i32, i32
  }
}

</mosaic_0001>

<bundles_post_ra>
// kernel: tpu_custom_call.1
= control target key start
LH: loop header
LB: loop body
LE: loop exit
PB: predicated region body
PF: predicated region fallthrough
CT: control target
= control target key end

     0   :  { %10 = vsyncpa [#allocation3], 0  ;;  %s2597_s0 = inlined_call_operand.vmem [shape: f32[1024,8], index: 0, kind: input, shape index: {}]   ;;  %s2598_s1 = inlined_call_operand.vmem [shape: f32[8,128], index: 1, kind: input, shape index: {}]   ;;  %s2599_s2 = inlined_call_operand.vmem [shape: f32[1,128], index: 2, kind: input, shape index: {}]   ;;  %s2600_s3 = inlined_call_operand.vmem [shape: f32[128,128], index: 3, kind: input, shape index: {}]   ;;  %s2601_s4 = inlined_call_operand.vmem [shape: f32[1,128], index: 4, kind: input, shape index: {}]   ;;  %s2602_s5 = inlined_call_operand.hbm [shape: f32[1024,128], index: 5, kind: output, shape index: {}]  }
   0x1   :  { %12 = vsyncpa [#allocation3 + $0x1], 0  ;;  %s2106_s18 = smov 0   ;;  %s2108_s19 = smov 0  }
   0x2   :  { %s2110_s20 = smov 0   ;;  %s2112_s21 = smov 0  }
   0x3 LB: > { %s2127_s22 = sadd.s32 4294967295, %s2071_s21   ;;  %s1488_s23 = sadd.s32 4294967294, %s2071_s21   ;;  %s2071_s21 = sphi %s2112_s21, %s2608_s21   ;;  %s2067_s20 = sphi %s2110_s20, %s2607_s20   ;;  %s2063_s19 = sphi %s2108_s19, %s2606_s19   ;;  %s2059_s18 = sphi %s2106_s18, %s2605_s18  }
   0x4   : > { %s2131_s24 = sadd.s32 1, %s2071_s21   ;;  %s135_s25 = sadd.s32 1, %s2067_s20 }
   0x5   : > { %s132_s26 = ssub.s32 %s2071_s21, %s2131_s24  ;;  %p145_p0 = scmp.ne.s32.totalorder %s2067_s20, %s2063_s19 }
   0x6   : > { %p133_p1 = scmp.eq.s32.totalorder %s132_s26, 0  ;;  %p146_p2 = scmp.eq.s32.totalorder %s2127_s22, 1 }
   0x7   : > { %p151_p3 = scmp.ne.s32.totalorder %s2063_s19, %s2059_s18  ;;  %p152_p4 = scmp.eq.s32.totalorder %s1488_s23, 1 }
   0x8   : > { %s2142_s27 = scalar_select %p133_p1, %s2067_s20, %s135_s25  }
   0x9   : > { %p2144_p5 = por %p146_p2, %p145_p0  ;;  %p2148_p6 = por %p152_p4, %p151_p3 }
   0xa   : > { %p1491_p7 = scmp.ge.s32.totalorder %s2071_s21, 1  ;;  %p191_p8 = scmp.lt.s32.totalorder %s2071_s21, 3 }
   0xc   : > { %p192_p9 = pnand %p1491_p7, %p191_p8 }
   0xd   : > { %s1493_s7 = sshll.u32 (!%p192_p9), %s2127_s22, 6  ;;  %s1566_s26 = sshll.u32 (!%p192_p9), %s2127_s22, 13 }
   0xe   : > { %195 = sbr.rel (%p192_p9) target bundleno = 559 (0x22f), region = 40  ;;  %p220_p10 = scmp.lt.s32.totalorder (!%p192_p9), %s1493_s7, 127 }
   0xf   : > { %s2073_s10 = smov (!%p192_p9), [#allocation2]  }
  0x10   : > { %s2015_s11 = sshll.u32 (!%p192_p9), %s2073_s10, 4  ;;  %s2016_s11 = int_to_ptr.vmem [resolvable:$false] %s2015_s11 }
  0x11   : > { %s2017_s12 = scalar_lea.vmem (!%p192_p9), %s2016_s11, 16384 }
  0x13   : > { %v290_v0 = vld [vmem:[%s2598_s1] sm:$0xff]  ;;  %s2610_s7 = smov (!%p220_p10, %s1493_s7), 127  ;;  %vm298_vm0 = vcmask 64512   ;;  %v955_v1 = vld [vmem:[%s2600_s3 + $0x78] sm:$0xff]  ;;  %v954_v2 = vld [vmem:[%s2600_s3 + $0x70] sm:$0xff] }
  0x14   : > { %1712 = vmatprep.subr.mxu0 %v290_v0  ;;  %s1494_s8 = sshll.u32 %s2610_s7, 3  ;;  %1938 = vmatprep.subr.mxu1 %v955_v1  ;;  %v953_v7 = vld [vmem:[%s2600_s3 + $0x68] sm:$0xff]  ;;  %v952_v9 = vld [vmem:[%s2600_s3 + $0x60] sm:$0xff]  ;;  %v951_v11 = vld [vmem:[%s2600_s3 + $0x58] sm:$0xff] }
  0x15   : > { %1713 = vmatpush3.msra.mxu0 %v290_v0  ;;  %s2164_s13 = scalar_lea.vmem %s2597_s0, %s1494_s8  ;;  %1954 = vmatpush3.msra.mxu1 %v955_v1  ;;  %v950_v13 = vld [vmem:[%s2600_s3 + $0x50] sm:$0xff]  ;;  %v949_v20 = vld [vmem:[%s2600_s3 + $0x48] sm:$0xff]  ;;  %v948_v21 = vld [vmem:[%s2600_s3 + $0x40] sm:$0xff]  ;;  %s2548_s8 = scalar_lea.hbm %s2602_s5, %s1566_s26 }
  0x16   : > { %1810 = vmatprep.subr.mxu0 %v955_v1  ;;  %v226_v3 = vld [vmem:[%s2164_s13] sm:$0xff]  ;;  %v227_v4 = vld [vmem:[%s2164_s13 + $0x8] sm:$0xff]  ;;  %v228_v5 = vld [vmem:[%s2164_s13 + $0x10] sm:$0xff]  ;;  %1939 = vmatprep.subr.mxu1 %v954_v2 }
  0x17   : > { %1714 = vmatprep.mubr.msk.f32.mxu0 %vm298_vm0, %v226_v3  ;;  %1955 = vmatpush3.msra.mxu1 %v954_v2  ;;  %v229_v6 = vld [vmem:[%s2164_s13 + $0x18] sm:$0xff]  ;;  %v230_v8 = vld [vmem:[%s2164_s13 + $0x20] sm:$0xff]  ;;  %v231_v10 = vld [vmem:[%s2164_s13 + $0x28] sm:$0xff] }
  0x18   : > { %1715 = vmatmul.mubr.msk.f32.vlgmr.msra.gmra.mxu0 %vm298_vm0, %v227_v4  ;;  %1940 = vmatprep.subr.mxu1 %v953_v7  ;;  %v232_v12 = vld [vmem:[%s2164_s13 + $0x30] sm:$0xff]  ;;  %v233_v14 = vld [vmem:[%s2164_s13 + $0x38] sm:$0xff]  ;;  %v234_v15 = vld [vmem:[%s2164_s13 + $0x40] sm:$0xff] }
  0x19   : > { %1717 = vmatprep.mubr.msk.f32.mxu0 %vm298_vm0, %v228_v5  ;;  %1811 = vmatpush3.msra.mxu0 %v955_v1  ;;  %v235_v16 = vld [vmem:[%s2164_s13 + $0x48] sm:$0xff]  ;;  %v236_v17 = vld [vmem:[%s2164_s13 + $0x50] sm:$0xff]  ;;  %v237_v18 = vld [vmem:[%s2164_s13 + $0x58] sm:$0xff] }
  0x1a   : > { %1812 = vmatprep.subr.mxu0 %v954_v2  ;;  %1956 = vmatpush3.msra.mxu1 %v953_v7  ;;  %v238_v19 = vld [vmem:[%s2164_s13 + $0x60] sm:$0xff]  ;;  %v239_v22 = vld [vmem:[%s2164_s13 + $0x68] sm:$0xff]  ;;  %v947_v23 = vld [vmem:[%s2600_s3 + $0x38] sm:$0xff] }
  0x1b   : > { %1813 = vmatpush3.msra.mxu0 %v954_v2  ;;  %1941 = vmatprep.subr.mxu1 %v952_v9  ;;  %v240_v24 = vld [vmem:[%s2164_s13 + $0x70] sm:$0xff]  ;;  %v241_v26 = vld [vmem:[%s2164_s13 + $0x78] sm:$0xff]  ;;  %v945_v27 = vld [vmem:[%s2600_s3 + $0x28] sm:$0xff] }
  0x1c   : > { %1718 = vmatmul.mubr.msk.f32.gmra.mxu0 %vm298_vm0, %v229_v6  ;;  %1814 = vmatprep.subr.mxu0 %v953_v7  ;;  %v946_v25 = vld [vmem:[%s2600_s3 + $0x30] sm:$0xff]  ;;  %v242_v28 = vld [vmem:[%s2164_s13 + $0x80] sm:$0xff]  ;;  %v243_v30 = vld [vmem:[%s2164_s13 + $0x88] sm:$0xff] }
  0x1d   : > { %1720 = vmatprep.mubr.msk.f32.mxu0 %vm298_vm0, %v230_v8  ;;  %1815 = vmatpush3.msra.mxu0 %v953_v7  ;;  %v944_v29 = vld [vmem:[%s2600_s3 + $0x20] sm:$0xff]  ;;  %v244_v31 = vld [vmem:[%s2164_s13 + $0x90] sm:$0xff]  ;;  %v245_v32 = vld [vmem:[%s2164_s13 + $0x98] sm:$0xff] }
  0x1e   : > { %1816 = vmatprep.subr.mxu0 %v952_v9  ;;  %1957 = vmatpush3.msra.mxu1 %v952_v9  ;;  %v246_v33 = vld [vmem:[%s2164_s13 + $0xa0] sm:$0xff]  ;;  %v247_v34 = vld [vmem:[%s2164_s13 + $0xa8] sm:$0xff]  ;;  %v248_v35 = vld [vmem:[%s2164_s13 + $0xb0] sm:$0xff] }
  0x1f   : > { %1817 = vmatpush3.msra.mxu0 %v952_v9  ;;  %1942 = vmatprep.subr.mxu1 %v951_v11  ;;  %v249_v36 = vld [vmem:[%s2164_s13 + $0xb8] sm:$0xff]  ;;  %v250_v37 = vld [vmem:[%s2164_s13 + $0xc0] sm:$0xff]  ;;  %v251_v38 = vld [vmem:[%s2164_s13 + $0xc8] sm:$0xff] }
  0x20   : > { %1721 = vmatmul.mubr.msk.f32.gmra.mxu0 %vm298_vm0, %v231_v10  ;;  %1818 = vmatprep.subr.mxu0 %v951_v11  ;;  %v252_v39 = vld [vmem:[%s2164_s13 + $0xd0] sm:$0xff]  ;;  %v253_v40 = vld [vmem:[%s2164_s13 + $0xd8] sm:$0xff]  ;;  %v254_v41 = vld [vmem:[%s2164_s13 + $0xe0] sm:$0xff] }
  0x21   : > { %1723 = vmatprep.mubr.msk.f32.mxu0 %vm298_vm0, %v232_v12  ;;  %1819 = vmatpush3.msra.mxu0 %v951_v11  ;;  %v255_v42 = vld [vmem:[%s2164_s13 + $0xe8] sm:$0xff]  ;;  %v256_v43 = vld [vmem:[%s2164_s13 + $0xf0] sm:$0xff]  ;;  %v257_v44 = vld [vmem:[%s2164_s13 + $0xf8] sm:$0xff] }
  0x22   : > { %1820 = vmatprep.subr.mxu0 %v950_v13  ;;  %1958 = vmatpush3.msra.mxu1 %v951_v11  ;;  %v258_v45 = vld [vmem:[%s2164_s13 + $0x100] sm:$0xff]  ;;  %v259_v46 = vld [vmem:[%s2164_s13 + $0x108] sm:$0xff]  ;;  %v260_v47 = vld [vmem:[%s2164_s13 + $0x110] sm:$0xff] }
  0x23   : > { %1821 = vmatpush3.msra.mxu0 %v950_v13  ;;  %1943 = vmatprep.subr.mxu1 %v950_v13  ;;  %v943_v48 = vld [vmem:[%s2600_s3 + $0x18] sm:$0xff]  ;;  %v942_v50 = vld [vmem:[%s2600_s3 + $0x10] sm:$0xff]  ;;  %v262_v51 = vld [vmem:[%s2164_s13 + $0x120] sm:$0xff] }
  0x24   : > { %1724 = vmatmul.mubr.msk.f32.gmra.mxu0 %vm298_vm0, %v233_v14  ;;  %1959 = vmatpush3.msra.mxu1 %v950_v13  ;;  %v261_v49 = vld [vmem:[%s2164_s13 + $0x118] sm:$0xff]  ;;  %v941_v52 = vld [vmem:[%s2600_s3 + $0x8] sm:$0xff]  ;;  %v940_v54 = vld [vmem:[%s2600_s3] sm:$0xff] }
  0x25   : > { %1726 = vmatprep.mubr.msk.f32.mxu0 %vm298_vm0, %v234_v15  ;;  %1822 = vmatprep.subr.mxu0 %v949_v20  ;;  %v263_v53 = vld [vmem:[%s2164_s13 + $0x128] sm:$0xff]  ;;  %v264_v55 = vld [vmem:[%s2164_s13 + $0x130] sm:$0xff]  ;;  %v265_v56 = vld [vmem:[%s2164_s13 + $0x138] sm:$0xff] }
  0x26   : > { %1823 = vmatpush3.msra.mxu0 %v949_v20  ;;  %1944 = vmatprep.subr.mxu1 %v949_v20  ;;  %v266_v57 = vld [vmem:[%s2164_s13 + $0x140] sm:$0xff]  ;;  %v267_v58 = vld [vmem:[%s2164_s13 + $0x148] sm:$0xff]  ;;  %v268_v59 = vld [vmem:[%s2164_s13 + $0x150] sm:$0xff] }
  0x27   : > { %1824 = vmatprep.subr.mxu0 %v948_v21  ;;  %1960 = vmatpush3.msra.mxu1 %v949_v20  ;;  %v269_v60 = vld [vmem:[%s2164_s13 + $0x158] sm:$0xff]  ;;  %v270_v61 = vld [vmem:[%s2164_s13 + $0x160] sm:$0xff]  ;;  %v271_v62 = vld [vmem:[%s2164_s13 + $0x168] sm:$0xff] }
  0x28   : > { %1727 = vmatmul.mubr.msk.f32.gmra.mxu0 %vm298_vm0, %v235_v16  ;;  %1945 = vmatprep.subr.mxu1 %v948_v21  ;;  %v272_v63 = vld [vmem:[%s2164_s13 + $0x170] sm:$0xff]  ;;  %v273_v0 = vld [vmem:[%s2164_s13 + $0x178] sm:$0xff]  ;;  %v274_v1 = vld [vmem:[%s2164_s13 + $0x180] sm:$0xff] }
  0x29   : > { %1729 = vmatprep.mubr.msk.f32.mxu0 %vm298_vm0, %v236_v17  ;;  %1825 = vmatpush3.msra.mxu0 %v948_v21  ;;  %v275_v2 = vld [vmem:[%s2164_s13 + $0x188] sm:$0xff]  ;;  %v276_v3 = vld [vmem:[%s2164_s13 + $0x190] sm:$0xff]  ;;  %v277_v4 = vld [vmem:[%s2164_s13 + $0x198] sm:$0xff] }
  0x2a   : > { %1826 = vmatprep.subr.mxu0 %v947_v23  ;;  %1961 = vmatpush3.msra.mxu1 %v948_v21  ;;  %v278_v5 = vld [vmem:[%s2164_s13 + $0x1a0] sm:$0xff]  ;;  %v279_v6 = vld [vmem:[%s2164_s13 + $0x1a8] sm:$0xff]  ;;  %v280_v7 = vld [vmem:[%s2164_s13 + $0x1b0] sm:$0xff] }
  0x2b   : > { %1827 = vmatpush3.msra.mxu0 %v947_v23  ;;  %1946 = vmatprep.subr.mxu1 %v947_v23  ;;  %v281_v8 = vld [vmem:[%s2164_s13 + $0x1b8] sm:$0xff]  ;;  %v282_v9 = vld [vmem:[%s2164_s13 + $0x1c0] sm:$0xff]  ;;  %v283_v10 = vld [vmem:[%s2164_s13 + $0x1c8] sm:$0xff] }
  0x2c   : > { %1730 = vmatmul.mubr.msk.f32.gmra.mxu0 %vm298_vm0, %v237_v18  ;;  %1828 = vmatprep.subr.mxu0 %v946_v25  ;;  %v284_v11 = vld [vmem:[%s2164_s13 + $0x1d0] sm:$0xff]  ;;  %v285_v12 = vld [vmem:[%s2164_s13 + $0x1d8] sm:$0xff]  ;;  %v286_v13 = vld [vmem:[%s2164_s13 + $0x1e0] sm:$0xff] }
  0x2d   : > { %1732 = vmatprep.mubr.msk.f32.mxu0 %vm298_vm0, %v238_v19  ;;  %1829 = vmatpush3.msra.mxu0 %v946_v25  ;;  %v287_v14 = vld [vmem:[%s2164_s13 + $0x1e8] sm:$0xff]  ;;  %v288_v15 = vld [vmem:[%s2164_s13 + $0x1f0] sm:$0xff]  ;;  %v289_v16 = vld [vmem:[%s2164_s13 + $0x1f8] sm:$0xff]  ;;  %s216_s13 = sand.u32 1, %s2063_s19  }
  0x2e   : > { %1830 = vmatprep.subr.mxu0 %v945_v27  ;;  %1962 = vmatpush3.msra.mxu1 %v947_v23  ;;  %v2342_v17 = vld [vmem:[%s2599_s2] ss:$0 sm:$0xff]  ;;  %s1492_s16 = sshll.u32 %s216_s13, 9  ;;  %s2557_s22 = scalar_lea.sflag [#allocation3], %s216_s13 }
  0x2f   : > { %1831 = vmatpush3.msra.mxu0 %v945_v27  ;;  %1947 = vmatprep.subr.mxu1 %v946_v25  ;;  %s2417_s25 = scalar_lea.vmem [#allocation2], %s1492_s16 }
  0x30   : > { %1733 = vmatmul.mubr.msk.f32.gmra.mxu0 %vm298_vm0, %v239_v22  ;;  %1832 = vmatprep.subr.mxu0 %v944_v29  ;;  %s1426_s30 = sshll.u32 %s2417_s25, 4  ;;  %s2550_s30 = int_to_ptr.vmem [resolvable:$true] %s1426_s30 }
  0x31   : > { %1735 = vmatprep.mubr.msk.f32.mxu0 %vm298_vm0, %v240_v24  ;;  %1833 = vmatpush3.msra.mxu0 %v944_v29  ;;  %s2011_s9 = scalar_lea.vmem %s2550_s30, 8192  ;;  %p2018_p0 = scmp.lt.s32.totalorder %s2550_s30, %s2016_s11 }
  0x32   : > { %1963 = vmatpush3.msra.mxu1 %v946_v25  ;;  %1834 = vmatprep.subr.mxu0 %v943_v48  ;;  %p2012_p11 = scmp.ne.s32.totalorder %s2550_s30, %s2011_s9  ;;  %p2019_p1 = scmp.lt.s32.totalorder %s2017_s12, %s2011_s9 }
  0x33   : > { %1948 = vmatprep.subr.mxu1 %v945_v27  ;;  %1835 = vmatpush3.msra.mxu0 %v943_v48 }
  0x34   : > { %1736 = vmatmul.mubr.msk.f32.gmra.mxu0 %vm298_vm0, %v241_v26  ;;  %1964 = vmatpush3.msra.mxu1 %v945_v27  ;;  %p2013_p12 = pnand %p2012_p11, %p2144_p5  ;;  %p2020_p2 = por %p2019_p1, %p2018_p0 }
  0x35   : > { %1738 = vmatprep.mubr.msk.f32.mxu0 %vm298_vm0, %v242_v28  ;;  %1949 = vmatprep.subr.mxu1 %v944_v29 }
  0x36   : > { %1965 = vmatpush3.msra.mxu1 %v944_v29  ;;  %1836 = vmatprep.subr.mxu0 %v942_v50  ;;  %p2014_p13 = pneg %p2013_p12 }
  0x37   : > { %1950 = vmatprep.subr.mxu1 %v943_v48  ;;  %1837 = vmatpush3.msra.mxu0 %v942_v50 }
  0x38   : > { %1739 = vmatmul.mubr.msk.f32.gmra.mxu0 %vm298_vm0, %v243_v30  ;;  %1966 = vmatpush3.msra.mxu1 %v943_v48  ;;  %p2021_p3 = pnand %p2020_p2, %p2014_p13 }
  0x39   : > { %1741 = vmatprep.mubr.msk.f32.mxu0 %vm298_vm0, %v244_v31  ;;  %1838 = vmatprep.subr.mxu0 %v941_v52 }
  0x3a   : > { %1839 = vmatpush3.msra.mxu0 %v941_v52  ;;  %1951 = vmatprep.subr.mxu1 %v942_v50 }
  0x3b   : > { %1840 = vmatprep.subr.mxu0 %v940_v54  ;;  %1967 = vmatpush3.msra.mxu1 %v942_v50 }
  0x3c   : > { %1742 = vmatmul.mubr.msk.f32.gmra.mxu0 %vm298_vm0, %v245_v32  ;;  %1952 = vmatprep.subr.mxu1 %v941_v52 }
  0x3d   : > { %1744 = vmatprep.mubr.msk.f32.mxu0 %vm298_vm0, %v246_v33  ;;  %1841 = vmatpush3.msra.mxu0 %v940_v54 }
  0x3e   : > { %1968 = vmatpush3.msra.mxu1 %v941_v52 }
  0x3f   : > { %1953 = vmatprep.subr.mxu1 %v940_v54 }
  0x40   : > { %1745 = vmatmul.mubr.msk.f32.gmra.mxu0 %vm298_vm0, %v247_v34  ;;  %1969 = vmatpush3.msra.mxu1 %v940_v54 }
  0x41   : > { %1747 = vmatprep.mubr.msk.f32.mxu0 %vm298_vm0, %v248_v35 }
  0x44   : > { %1748 = vmatmul.mubr.msk.f32.gmra.mxu0 %vm298_vm0, %v249_v36 }
  0x45   : > { %1750 = vmatprep.mubr.msk.f32.mxu0 %vm298_vm0, %v250_v37 }
  0x48   : > { %1751 = vmatmul.mubr.msk.f32.gmra.mxu0 %vm298_vm0, %v251_v38 }
  0x49   : > { %1753 = vmatprep.mubr.msk.f32.mxu0 %vm298_vm0, %v252_v39 }
  0x4c   : > { %1754 = vmatmul.mubr.msk.f32.gmra.mxu0 %vm298_vm0, %v253_v40 }
  0x4d   : > { %1756 = vmatprep.mubr.msk.f32.mxu0 %vm298_vm0, %v254_v41 }
  0x50   : > { %1757 = vmatmul.mubr.msk.f32.gmra.mxu0 %vm298_vm0, %v255_v42 }
  0x51   : > { %1759 = vmatprep.mubr.msk.f32.mxu0 %vm298_vm0, %v256_v43 }
  0x54   : > { %1760 = vmatmul.mubr.msk.f32.gmra.mxu0 %vm298_vm0, %v257_v44 }
  0x55   : > { %1762 = vmatprep.mubr.msk.f32.mxu0 %vm298_vm0, %v258_v45 }
  0x58   : > { %1763 = vmatmul.mubr.msk.f32.gmra.mxu0 %vm298_vm0, %v259_v46 }
  0x59   : > { %1765 = vmatprep.mubr.msk.f32.mxu0 %vm298_vm0, %v260_v47 }
  0x5c   : > { %1766 = vmatmul.mubr.msk.f32.gmra.mxu0 %vm298_vm0, %v261_v49 }
  0x5d   : > { %1768 = vmatprep.mubr.msk.f32.mxu0 %vm298_vm0, %v262_v51 }
  0x60   : > { %1769 = vmatmul.mubr.msk.f32.gmra.mxu0 %vm298_vm0, %v263_v53 }
  0x61   : > { %1771 = vmatprep.mubr.msk.f32.mxu0 %vm298_vm0, %v264_v55 }
  0x64   : > { %1772 = vmatmul.mubr.msk.f32.gmra.mxu0 %vm298_vm0, %v265_v56 }
  0x65   : > { %1774 = vmatprep.mubr.msk.f32.mxu0 %vm298_vm0, %v266_v57 }
  0x68   : > { %1775 = vmatmul.mubr.msk.f32.gmra.mxu0 %vm298_vm0, %v267_v58 }
  0x69   : > { %1777 = vmatprep.mubr.msk.f32.mxu0 %vm298_vm0, %v268_v59 }
  0x6c   : > { %1778 = vmatmul.mubr.msk.f32.gmra.mxu0 %vm298_vm0, %v269_v60 }
  0x6d   : > { %1780 = vmatprep.mubr.msk.f32.mxu0 %vm298_vm0, %v270_v61 }
  0x70   : > { %1781 = vmatmul.mubr.msk.f32.gmra.mxu0 %vm298_vm0, %v271_v62 }
  0x71   : > { %1783 = vmatprep.mubr.msk.f32.mxu0 %vm298_vm0, %v272_v63 }
  0x74   : > { %1784 = vmatmul.mubr.msk.f32.gmra.mxu0 %vm298_vm0, %v273_v0 }
  0x75   : > { %1786 = vmatprep.mubr.msk.f32.mxu0 %vm298_vm0, %v274_v1 }
  0x78   : > { %1787 = vmatmul.mubr.msk.f32.gmra.mxu0 %vm298_vm0, %v275_v2 }
  0x79   : > { %1789 = vmatprep.mubr.msk.f32.mxu0 %vm298_vm0, %v276_v3 }
  0x7c   : > { %1790 = vmatmul.mubr.msk.f32.gmra.mxu0 %vm298_vm0, %v277_v4 }
  0x7d   : > { %1792 = vmatprep.mubr.msk.f32.mxu0 %vm298_vm0, %v278_v5 }
  0x80   : > { %1793 = vmatmul.mubr.msk.f32.gmra.mxu0 %vm298_vm0, %v279_v6 }
  0x81   : > { %1795 = vmatprep.mubr.msk.f32.mxu0 %vm298_vm0, %v280_v7 }
  0x84   : > { %1796 = vmatmul.mubr.msk.f32.gmra.mxu0 %vm298_vm0, %v281_v8 }
  0x85   : > { %1798 = vmatprep.mubr.msk.f32.mxu0 %vm298_vm0, %v282_v9 }
  0x88   : > { %1799 = vmatmul.mubr.msk.f32.gmra.mxu0 %vm298_vm0, %v283_v10 }
  0x89   : > { %1801 = vmatprep.mubr.msk.f32.mxu0 %vm298_vm0, %v284_v11 }
  0x8c   : > { %1802 = vmatmul.mubr.msk.f32.gmra.mxu0 %vm298_vm0, %v285_v12 }
  0x8d   : > { %1804 = vmatprep.mubr.msk.f32.mxu0 %vm298_vm0, %v286_v13 }
  0x90   : > { %1805 = vmatmul.mubr.msk.f32.gmra.mxu0 %vm298_vm0, %v287_v14 }
  0x91   : > { %1807 = vmatprep.mubr.msk.f32.mxu0 %vm298_vm0, %v288_v15 }
  0x94   : > { %1808 = vmatmul.mubr.msk.f32.gmra.mxu0 %vm298_vm0, %v289_v16 }
  0xd8   : > { %v1716_v18 = vpop.f32.mrf.mxu0 }
  0xd9   : > { %v563_v19 = vadd.f32 %v1716_v18, %v2342_v17 }
  0xda   : > { %v557_v20 = vpop.f32.mrf.mxu0 }
  0xdb   : > { %v558_v21 = vadd.f32 %v2342_v17, %v557_v20  ;;  %v877_v24 = vmax.f32 %v563_v19, 0.0 }
  0xdc   : > { %v1719_v22 = vpop.f32.mrf.mxu0 }
  0xdd   : > { %v876_v23 = vmax.f32 %v558_v21, 0.0  ;;  %v573_v25 = vadd.f32 %v1719_v22, %v2342_v17 }
  0xde   : > { %v567_v26 = vpop.f32.mrf.mxu0 }
  0xdf   : > { %v568_v27 = vadd.f32 %v2342_v17, %v567_v26  ;;  %1842 = vmatprep.mubr.f32.mxu0 %v876_v23  ;;  %v879_v30 = vmax.f32 %v573_v25, 0.0 }
  0xe0   : > { %v1722_v28 = vpop.f32.mrf.mxu0  ;;  %1843 = vmatmul.mubr.f32.vlgmr.msra.gmra.mxu0 %v877_v24 }
  0xe1   : > { %v878_v29 = vmax.f32 %v568_v27, 0.0  ;;  %v583_v31 = vadd.f32 %v1722_v28, %v2342_v17 }
  0xe2   : > { %v577_v32 = vpop.f32.mrf.mxu0 }
  0xe3   : > { %v578_v33 = vadd.f32 %v2342_v17, %v577_v32  ;;  %1845 = vmatprep.mubr.f32.mxu0 %v878_v29  ;;  %v881_v36 = vmax.f32 %v583_v31, 0.0 }
  0xe4   : > { %v1725_v34 = vpop.f32.mrf.mxu0  ;;  %1846 = vmatmul.mubr.f32.gmra.mxu0 %v879_v30 }
  0xe5   : > { %v880_v35 = vmax.f32 %v578_v33, 0.0  ;;  %v593_v37 = vadd.f32 %v1725_v34, %v2342_v17 }
  0xe6   : > { %v587_v38 = vpop.f32.mrf.mxu0 }
  0xe7   : > { %1848 = vmatprep.mubr.f32.mxu0 %v880_v35  ;;  %v588_v39 = vadd.f32 %v2342_v17, %v587_v38  ;;  %v883_v42 = vmax.f32 %v593_v37, 0.0 }
  0xe8   : > { %v1728_v40 = vpop.f32.mrf.mxu0  ;;  %1849 = vmatmul.mubr.f32.gmra.mxu0 %v881_v36 }
  0xe9   : > { %v882_v41 = vmax.f32 %v588_v39, 0.0  ;;  %v603_v43 = vadd.f32 %v1728_v40, %v2342_v17 }
  0xea   : > { %v597_v44 = vpop.f32.mrf.mxu0 }
  0xeb   : > { %v598_v45 = vadd.f32 %v2342_v17, %v597_v44  ;;  %1851 = vmatprep.mubr.f32.mxu1 %v882_v41  ;;  %v885_v48 = vmax.f32 %v603_v43, 0.0 }
  0xec   : > { %v1731_v46 = vpop.f32.mrf.mxu0  ;;  %1852 = vmatmul.mubr.f32.vlgmr.msra.gmra.mxu1 %v883_v42 }
  0xed   : > { %v884_v47 = vmax.f32 %v598_v45, 0.0  ;;  %v613_v49 = vadd.f32 %v1731_v46, %v2342_v17 }
  0xee   : > { %v607_v50 = vpop.f32.mrf.mxu0 }
  0xef   : > { %v608_v51 = vadd.f32 %v2342_v17, %v607_v50  ;;  %1854 = vmatprep.mubr.f32.mxu1 %v884_v47  ;;  %v887_v54 = vmax.f32 %v613_v49, 0.0 }
  0xf0   : > { %v1734_v52 = vpop.f32.mrf.mxu0  ;;  %1855 = vmatmul.mubr.f32.gmra.mxu1 %v885_v48 }
  0xf1   : > { %v886_v53 = vmax.f32 %v608_v51, 0.0  ;;  %v623_v55 = vadd.f32 %v1734_v52, %v2342_v17 }
  0xf2   : > { %v617_v56 = vpop.f32.mrf.mxu0 }
  0xf3   : > { %v618_v57 = vadd.f32 %v2342_v17, %v617_v56  ;;  %1857 = vmatprep.mubr.f32.mxu1 %v886_v53  ;;  %v889_v60 = vmax.f32 %v623_v55, 0.0 }
  0xf4   : > { %v1737_v58 = vpop.f32.mrf.mxu0  ;;  %1858 = vmatmul.mubr.f32.gmra.mxu1 %v887_v54 }
  0xf5   : > { %v888_v59 = vmax.f32 %v618_v57, 0.0  ;;  %v633_v61 = vadd.f32 %v1737_v58, %v2342_v17 }
  0xf6   : > { %v627_v62 = vpop.f32.mrf.mxu0 }
  0xf7   : > { %v628_v63 = vadd.f32 %v2342_v17, %v627_v62  ;;  %1860 = vmatprep.mubr.f32.mxu1 %v888_v59  ;;  %v891_v2 = vmax.f32 %v633_v61, 0.0 }
  0xf8   : > { %v1740_v0 = vpop.f32.mrf.mxu0  ;;  %1861 = vmatmul.mubr.f32.gmra.mxu1 %v889_v60 }
  0xf9   : > { %v890_v1 = vmax.f32 %v628_v63, 0.0  ;;  %v643_v3 = vadd.f32 %v1740_v0, %v2342_v17 }
  0xfa   : > { %v637_v4 = vpop.f32.mrf.mxu0 }
  0xfb   : > { %v638_v5 = vadd.f32 %v2342_v17, %v637_v4  ;;  %1863 = vmatprep.mubr.f32.mxu1 %v890_v1  ;;  %v893_v8 = vmax.f32 %v643_v3, 0.0 }
  0xfc   : > { %v1743_v6 = vpop.f32.mrf.mxu0  ;;  %1864 = vmatmul.mubr.f32.gmra.mxu1 %v891_v2 }
  0xfd   : > { %v892_v7 = vmax.f32 %v638_v5, 0.0  ;;  %v653_v9 = vadd.f32 %v1743_v6, %v2342_v17 }
  0xfe   : > { %v647_v10 = vpop.f32.mrf.mxu0 }
  0xff   : > { %v648_v11 = vadd.f32 %v2342_v17, %v647_v10  ;;  %1866 = vmatprep.mubr.f32.mxu1 %v892_v7  ;;  %v895_v14 = vmax.f32 %v653_v9, 0.0 }
 0x100   : > { %v1746_v12 = vpop.f32.mrf.mxu0  ;;  %1867 = vmatmul.mubr.f32.gmra.mxu1 %v893_v8 }
 0x101   : > { %v894_v13 = vmax.f32 %v648_v11, 0.0  ;;  %v663_v15 = vadd.f32 %v1746_v12, %v2342_v17 }
 0x102   : > { %v657_v16 = vpop.f32.mrf.mxu0 }
 0x103   : > { %v658_v18 = vadd.f32 %v2342_v17, %v657_v16  ;;  %1869 = vmatprep.mubr.f32.mxu1 %v894_v13  ;;  %v897_v21 = vmax.f32 %v663_v15, 0.0 }
 0x104   : > { %v1749_v19 = vpop.f32.mrf.mxu0  ;;  %1870 = vmatmul.mubr.f32.gmra.mxu1 %v895_v14 }
 0x105   : > { %v896_v20 = vmax.f32 %v658_v18, 0.0  ;;  %v673_v22 = vadd.f32 %v1749_v19, %v2342_v17 }
 0x106   : > { %v667_v23 = vpop.f32.mrf.mxu0 }
 0x107   : > { %v668_v24 = vadd.f32 %v2342_v17, %v667_v23  ;;  %1872 = vmatprep.mubr.f32.mxu1 %v896_v20  ;;  %v899_v27 = vmax.f32 %v673_v22, 0.0 }
 0x108   : > { %v1752_v25 = vpop.f32.mrf.mxu0  ;;  %1873 = vmatmul.mubr.f32.gmra.mxu1 %v897_v21 }
 0x109   : > { %v898_v26 = vmax.f32 %v668_v24, 0.0  ;;  %v683_v28 = vadd.f32 %v1752_v25, %v2342_v17 }
 0x10a   : > { %v677_v29 = vpop.f32.mrf.mxu0 }
 0x10b   : > { %v678_v30 = vadd.f32 %v2342_v17, %v677_v29  ;;  %1875 = vmatprep.mubr.f32.mxu1 %v898_v26  ;;  %v901_v33 = vmax.f32 %v683_v28, 0.0 }
 0x10c   : > { %v1755_v31 = vpop.f32.mrf.mxu0  ;;  %1876 = vmatmul.mubr.f32.gmra.mxu1 %v899_v27 }
 0x10d   : > { %v900_v32 = vmax.f32 %v678_v30, 0.0  ;;  %v693_v34 = vadd.f32 %v1755_v31, %v2342_v17 }
 0x10e   : > { %v687_v35 = vpop.f32.mrf.mxu0 }
 0x10f   : > { %v688_v36 = vadd.f32 %v2342_v17, %v687_v35  ;;  %1878 = vmatprep.mubr.f32.mxu1 %v900_v32  ;;  %v903_v39 = vmax.f32 %v693_v34, 0.0 }
 0x110   : > { %v1758_v37 = vpop.f32.mrf.mxu0  ;;  %1879 = vmatmul.mubr.f32.gmra.mxu1 %v901_v33 }
 0x111   : > { %v902_v38 = vmax.f32 %v688_v36, 0.0  ;;  %v703_v40 = vadd.f32 %v1758_v37, %v2342_v17 }
 0x112   : > { %v697_v41 = vpop.f32.mrf.mxu0 }
 0x113   : > { %v698_v42 = vadd.f32 %v2342_v17, %v697_v41  ;;  %1881 = vmatprep.mubr.f32.mxu1 %v902_v38  ;;  %v905_v45 = vmax.f32 %v703_v40, 0.0 }
 0x114   : > { %v1761_v43 = vpop.f32.mrf.mxu0  ;;  %1882 = vmatmul.mubr.f32.gmra.mxu1 %v903_v39 }
 0x115   : > { %v904_v44 = vmax.f32 %v698_v42, 0.0  ;;  %v713_v46 = vadd.f32 %v1761_v43, %v2342_v17 }
 0x116   : > { %v707_v47 = vpop.f32.mrf.mxu0 }
 0x117   : > { %v708_v48 = vadd.f32 %v2342_v17, %v707_v47  ;;  %1884 = vmatprep.mubr.f32.mxu1 %v904_v44  ;;  %v907_v51 = vmax.f32 %v713_v46, 0.0 }
 0x118   : > { %v1764_v49 = vpop.f32.mrf.mxu0  ;;  %1885 = vmatmul.mubr.f32.gmra.mxu1 %v905_v45 }
 0x119   : > { %v906_v50 = vmax.f32 %v708_v48, 0.0  ;;  %v723_v52 = vadd.f32 %v1764_v49, %v2342_v17 }
 0x11a   : > { %v717_v53 = vpop.f32.mrf.mxu0 }
 0x11b   : > { %v718_v54 = vadd.f32 %v2342_v17, %v717_v53  ;;  %1887 = vmatprep.mubr.f32.mxu1 %v906_v50  ;;  %v909_v57 = vmax.f32 %v723_v52, 0.0 }
 0x11c   : > { %v1767_v55 = vpop.f32.mrf.mxu0  ;;  %1888 = vmatmul.mubr.f32.gmra.mxu1 %v907_v51 }
 0x11d   : > { %v908_v56 = vmax.f32 %v718_v54, 0.0  ;;  %v733_v58 = vadd.f32 %v1767_v55, %v2342_v17 }
 0x11e   : > { %v727_v59 = vpop.f32.mrf.mxu0 }
 0x11f   : > { %v728_v60 = vadd.f32 %v2342_v17, %v727_v59  ;;  %1890 = vmatprep.mubr.f32.mxu1 %v908_v56  ;;  %v911_v63 = vmax.f32 %v733_v58, 0.0 }
 0x120   : > { %v1770_v61 = vpop.f32.mrf.mxu0  ;;  %1891 = vmatmul.mubr.f32.gmra.mxu1 %v909_v57 }
 0x121   : > { %v910_v62 = vmax.f32 %v728_v60, 0.0  ;;  %v743_v0 = vadd.f32 %v1770_v61, %v2342_v17 }
 0x122   : > { %v737_v1 = vpop.f32.mrf.mxu0 }
 0x123   : > { %v738_v2 = vadd.f32 %v2342_v17, %v737_v1  ;;  %1893 = vmatprep.mubr.f32.mxu1 %v910_v62  ;;  %v913_v5 = vmax.f32 %v743_v0, 0.0 }
 0x124   : > { %v1773_v3 = vpop.f32.mrf.mxu0  ;;  %1894 = vmatmul.mubr.f32.gmra.mxu1 %v911_v63 }
 0x125   : > { %v912_v4 = vmax.f32 %v738_v2, 0.0  ;;  %v753_v6 = vadd.f32 %v1773_v3, %v2342_v17 }
 0x126   : > { %v747_v7 = vpop.f32.mrf.mxu0 }
 0x127   : > { %v748_v8 = vadd.f32 %v2342_v17, %v747_v7  ;;  %1896 = vmatprep.mubr.f32.mxu1 %v912_v4  ;;  %v915_v11 = vmax.f32 %v753_v6, 0.0 }
 0x128   : > { %v1776_v9 = vpop.f32.mrf.mxu0  ;;  %1897 = vmatmul.mubr.f32.gmra.mxu1 %v913_v5 }
 0x129   : > { %v914_v10 = vmax.f32 %v748_v8, 0.0  ;;  %v763_v12 = vadd.f32 %v1776_v9, %v2342_v17 }
 0x12a   : > { %v757_v13 = vpop.f32.mrf.mxu0 }
 0x12b   : > { %v758_v14 = vadd.f32 %v2342_v17, %v757_v13  ;;  %1899 = vmatprep.mubr.f32.mxu1 %v914_v10  ;;  %v917_v18 = vmax.f32 %v763_v12, 0.0 }
 0x12c   : > { %v1779_v15 = vpop.f32.mrf.mxu0  ;;  %1900 = vmatmul.mubr.f32.gmra.mxu1 %v915_v11 }
 0x12d   : > { %v916_v16 = vmax.f32 %v758_v14, 0.0  ;;  %v773_v19 = vadd.f32 %v1779_v15, %v2342_v17 }
 0x12e   : > { %v767_v20 = vpop.f32.mrf.mxu0 }
 0x12f   : > { %v768_v21 = vadd.f32 %v2342_v17, %v767_v20  ;;  %1902 = vmatprep.mubr.f32.mxu1 %v916_v16  ;;  %v919_v24 = vmax.f32 %v773_v19, 0.0 }
 0x130   : > { %v1782_v22 = vpop.f32.mrf.mxu0  ;;  %1903 = vmatmul.mubr.f32.gmra.mxu1 %v917_v18 }
 0x131   : > { %v918_v23 = vmax.f32 %v768_v21, 0.0  ;;  %v783_v25 = vadd.f32 %v1782_v22, %v2342_v17  ;;  %v2414_v21 = vld [vmem:[%s2601_s4] ss:$0 sm:$0xff] }
 0x132   : > { %v777_v26 = vpop.f32.mrf.mxu0 }
 0x133   : > { %v778_v27 = vadd.f32 %v2342_v17, %v777_v26  ;;  %1905 = vmatprep.mubr.f32.mxu1 %v918_v23  ;;  %v921_v30 = vmax.f32 %v783_v25, 0.0 }
 0x134   : > { %v1785_v28 = vpop.f32.mrf.mxu0  ;;  %1906 = vmatmul.mubr.f32.gmra.mxu1 %v919_v24 }
 0x135   : > { %v920_v29 = vmax.f32 %v778_v27, 0.0  ;;  %v793_v31 = vadd.f32 %v1785_v28, %v2342_v17 }
 0x136   : > { %v787_v32 = vpop.f32.mrf.mxu0 }
 0x137   : > { %v788_v33 = vadd.f32 %v2342_v17, %v787_v32  ;;  %1908 = vmatprep.mubr.f32.mxu1 %v920_v29  ;;  %v923_v36 = vmax.f32 %v793_v31, 0.0 }
 0x138   : > { %v1788_v34 = vpop.f32.mrf.mxu0  ;;  %1909 = vmatmul.mubr.f32.gmra.mxu1 %v921_v30 }
 0x139   : > { %v922_v35 = vmax.f32 %v788_v33, 0.0  ;;  %v803_v37 = vadd.f32 %v1788_v34, %v2342_v17 }
 0x13a   : > { %v797_v38 = vpop.f32.mrf.mxu0 }
 0x13b   : > { %v798_v39 = vadd.f32 %v2342_v17, %v797_v38  ;;  %1911 = vmatprep.mubr.f32.mxu1 %v922_v35  ;;  %v925_v42 = vmax.f32 %v803_v37, 0.0 }
 0x13c   : > { %v1791_v40 = vpop.f32.mrf.mxu0  ;;  %1912 = vmatmul.mubr.f32.gmra.mxu1 %v923_v36 }
 0x13d   : > { %v924_v41 = vmax.f32 %v798_v39, 0.0  ;;  %v813_v43 = vadd.f32 %v1791_v40, %v2342_v17 }
 0x13e   : > { %v807_v44 = vpop.f32.mrf.mxu0 }
 0x13f   : > { %v808_v45 = vadd.f32 %v2342_v17, %v807_v44  ;;  %1914 = vmatprep.mubr.f32.mxu1 %v924_v41  ;;  %v927_v48 = vmax.f32 %v813_v43, 0.0 }
 0x140   : > { %v1794_v46 = vpop.f32.mrf.mxu0  ;;  %1915 = vmatmul.mubr.f32.gmra.mxu1 %v925_v42 }
 0x141   : > { %v926_v47 = vmax.f32 %v808_v45, 0.0  ;;  %v823_v49 = vadd.f32 %v1794_v46, %v2342_v17 }
 0x142   : > { %v817_v50 = vpop.f32.mrf.mxu0 }
 0x143   : > { %v818_v51 = vadd.f32 %v2342_v17, %v817_v50  ;;  %1917 = vmatprep.mubr.f32.mxu1 %v926_v47  ;;  %v929_v54 = vmax.f32 %v823_v49, 0.0 }
 0x144   : > { %v1797_v52 = vpop.f32.mrf.mxu0  ;;  %1918 = vmatmul.mubr.f32.gmra.mxu1 %v927_v48 }
 0x145   : > { %v928_v53 = vmax.f32 %v818_v51, 0.0  ;;  %v833_v55 = vadd.f32 %v1797_v52, %v2342_v17 }
 0x146   : > { %v827_v56 = vpop.f32.mrf.mxu0 }
 0x147   : > { %v828_v57 = vadd.f32 %v2342_v17, %v827_v56  ;;  %1920 = vmatprep.mubr.f32.mxu1 %v928_v53  ;;  %v931_v60 = vmax.f32 %v833_v55, 0.0 }
 0x148   : > { %v1800_v58 = vpop.f32.mrf.mxu0  ;;  %1921 = vmatmul.mubr.f32.gmra.mxu1 %v929_v54 }
 0x149   : > { %v930_v59 = vmax.f32 %v828_v57, 0.0  ;;  %v843_v61 = vadd.f32 %v1800_v58, %v2342_v17 }
 0x14a   : > { %v837_v62 = vpop.f32.mrf.mxu0 }
 0x14b   : > { %v838_v63 = vadd.f32 %v2342_v17, %v837_v62  ;;  %1923 = vmatprep.mubr.f32.mxu1 %v930_v59  ;;  %v933_v2 = vmax.f32 %v843_v61, 0.0 }
 0x14c   : > { %v1803_v0 = vpop.f32.mrf.mxu0  ;;  %1924 = vmatmul.mubr.f32.gmra.mxu1 %v931_v60 }
 0x14d   : > { %v932_v1 = vmax.f32 %v838_v63, 0.0  ;;  %v853_v3 = vadd.f32 %v1803_v0, %v2342_v17 }
 0x14e   : > { %v847_v4 = vpop.f32.mrf.mxu0 }
 0x14f   : > { %v848_v5 = vadd.f32 %v2342_v17, %v847_v4  ;;  %1926 = vmatprep.mubr.f32.mxu1 %v932_v1  ;;  %v935_v8 = vmax.f32 %v853_v3, 0.0 }
 0x150   : > { %v1806_v6 = vpop.f32.mrf.mxu0  ;;  %1927 = vmatmul.mubr.f32.gmra.mxu1 %v933_v2 }
 0x151   : > { %v934_v7 = vmax.f32 %v848_v5, 0.0  ;;  %v863_v9 = vadd.f32 %v1806_v6, %v2342_v17 }
 0x152   : > { %v857_v10 = vpop.f32.mrf.mxu0 }
 0x153   : > { %v858_v11 = vadd.f32 %v2342_v17, %v857_v10  ;;  %1929 = vmatprep.mubr.f32.mxu1 %v934_v7  ;;  %v937_v14 = vmax.f32 %v863_v9, 0.0 }
 0x154   : > { %v1809_v12 = vpop.f32.mrf.mxu0  ;;  %1930 = vmatmul.mubr.f32.gmra.mxu1 %v935_v8 }
 0x155   : > { %v936_v13 = vmax.f32 %v858_v11, 0.0  ;;  %v873_v15 = vadd.f32 %v1809_v12, %v2342_v17 }
 0x156   : > { %v867_v16 = vpop.f32.mrf.mxu0 }
 0x157   : > { %v868_v18 = vadd.f32 %v2342_v17, %v867_v16  ;;  %1932 = vmatprep.mubr.f32.mxu1 %v936_v13  ;;  %v939_v20 = vmax.f32 %v873_v15, 0.0 }
 0x158   : > { %1933 = vmatmul.mubr.f32.gmra.mxu1 %v937_v14 }
 0x159   : > { %v938_v19 = vmax.f32 %v868_v18, 0.0 }
 0x15b   : > { %1935 = vmatprep.mubr.f32.mxu1 %v938_v19 }
 0x15c   : > { %1936 = vmatmul.mubr.f32.gmra.mxu1 %v939_v20 }
 0x1a0   : > { %v1844_v22 = vpop.f32.mrf.mxu0 }
 0x1a1   : > { %v1035_v23 = vadd.f32 %v1844_v22, %v2414_v21 }
 0x1a2   : > { %v1029_v24 = vpop.f32.mrf.mxu0 }
 0x1a3   : > { %1349 = vst [vmem:[%s2417_s25 + $0x8] sm:$0xff] %v1035_v23  ;;  %v1030_v17 = vadd.f32 %v2414_v21, %v1029_v24 }
 0x1a4   : > { %v1847_v25 = vpop.f32.mrf.mxu0 }
 0x1a5   : > { %1348 = vst [vmem:[%s2417_s25] sm:$0xff] %v1030_v17  ;;  %v1045_v26 = vadd.f32 %v1847_v25, %v2414_v21 }
 0x1a6   : > { %v1039_v27 = vpop.f32.mrf.mxu0 }
 0x1a7   : > { %1351 = vst [vmem:[%s2417_s25 + $0x18] sm:$0xff] %v1045_v26  ;;  %v1040_v28 = vadd.f32 %v2414_v21, %v1039_v27 }
 0x1a8   : > { %v1850_v29 = vpop.f32.mrf.mxu0 }
 0x1a9   : > { %1350 = vst [vmem:[%s2417_s25 + $0x10] sm:$0xff] %v1040_v28  ;;  %v1055_v30 = vadd.f32 %v1850_v29, %v2414_v21 }
 0x1aa   : > { %v1049_v31 = vpop.f32.mrf.mxu0 }
 0x1ab   : > { %1353 = vst [vmem:[%s2417_s25 + $0x28] sm:$0xff] %v1055_v30  ;;  %v1050_v32 = vadd.f32 %v2414_v21, %v1049_v31 }
 0x1ac   : > { %v1853_v33 = vpop.f32.mrf.mxu1 }
 0x1ad   : > { %1352 = vst [vmem:[%s2417_s25 + $0x20] sm:$0xff] %v1050_v32  ;;  %v1065_v34 = vadd.f32 %v1853_v33, %v2414_v21 }
 0x1ae   : > { %v1059_v35 = vpop.f32.mrf.mxu1 }
 0x1af   : > { %1355 = vst [vmem:[%s2417_s25 + $0x38] sm:$0xff] %v1065_v34  ;;  %v1060_v36 = vadd.f32 %v2414_v21, %v1059_v35 }
 0x1b0   : > { %v1856_v37 = vpop.f32.mrf.mxu1 }
 0x1b1   : > { %1354 = vst [vmem:[%s2417_s25 + $0x30] sm:$0xff] %v1060_v36  ;;  %v1075_v38 = vadd.f32 %v1856_v37, %v2414_v21 }
 0x1b2   : > { %v1069_v39 = vpop.f32.mrf.mxu1 }
 0x1b3   : > { %1357 = vst [vmem:[%s2417_s25 + $0x48] sm:$0xff] %v1075_v38  ;;  %v1070_v40 = vadd.f32 %v2414_v21, %v1069_v39 }
 0x1b4   : > { %v1859_v41 = vpop.f32.mrf.mxu1 }
 0x1b5   : > { %1356 = vst [vmem:[%s2417_s25 + $0x40] sm:$0xff] %v1070_v40  ;;  %v1085_v42 = vadd.f32 %v1859_v41, %v2414_v21 }
 0x1b6   : > { %v1079_v43 = vpop.f32.mrf.mxu1 }
 0x1b7   : > { %1359 = vst [vmem:[%s2417_s25 + $0x58] sm:$0xff] %v1085_v42  ;;  %v1080_v44 = vadd.f32 %v2414_v21, %v1079_v43 }
 0x1b8   : > { %v1862_v45 = vpop.f32.mrf.mxu1 }
 0x1b9   : > { %1358 = vst [vmem:[%s2417_s25 + $0x50] sm:$0xff] %v1080_v44  ;;  %v1095_v46 = vadd.f32 %v1862_v45, %v2414_v21 }
 0x1ba   : > { %v1089_v47 = vpop.f32.mrf.mxu1 }
 0x1bb   : > { %1361 = vst [vmem:[%s2417_s25 + $0x68] sm:$0xff] %v1095_v46  ;;  %v1090_v48 = vadd.f32 %v2414_v21, %v1089_v47 }
 0x1bc   : > { %v1865_v49 = vpop.f32.mrf.mxu1 }
 0x1bd   : > { %1360 = vst [vmem:[%s2417_s25 + $0x60] sm:$0xff] %v1090_v48  ;;  %v1105_v50 = vadd.f32 %v1865_v49, %v2414_v21 }
 0x1be   : > { %v1099_v51 = vpop.f32.mrf.mxu1 }
 0x1bf   : > { %1363 = vst [vmem:[%s2417_s25 + $0x78] sm:$0xff] %v1105_v50  ;;  %v1100_v52 = vadd.f32 %v2414_v21, %v1099_v51 }
 0x1c0   : > { %v1868_v53 = vpop.f32.mrf.mxu1 }
 0x1c1   : > { %1362 = vst [vmem:[%s2417_s25 + $0x70] sm:$0xff] %v1100_v52  ;;  %v1115_v54 = vadd.f32 %v1868_v53, %v2414_v21 }
 0x1c2   : > { %v1109_v55 = vpop.f32.mrf.mxu1 }
 0x1c3   : > { %1365 = vst [vmem:[%s2417_s25 + $0x88] sm:$0xff] %v1115_v54  ;;  %v1110_v56 = vadd.f32 %v2414_v21, %v1109_v55 }
 0x1c4   : > { %v1871_v57 = vpop.f32.mrf.mxu1 }
 0x1c5   : > { %1364 = vst [vmem:[%s2417_s25 + $0x80] sm:$0xff] %v1110_v56  ;;  %v1125_v58 = vadd.f32 %v1871_v57, %v2414_v21 }
 0x1c6   : > { %v1119_v59 = vpop.f32.mrf.mxu1 }
 0x1c7   : > { %1367 = vst [vmem:[%s2417_s25 + $0x98] sm:$0xff] %v1125_v58  ;;  %v1120_v60 = vadd.f32 %v2414_v21, %v1119_v59 }
 0x1c8   : > { %v1874_v61 = vpop.f32.mrf.mxu1 }
 0x1c9   : > { %1366 = vst [vmem:[%s2417_s25 + $0x90] sm:$0xff] %v1120_v60  ;;  %v1135_v62 = vadd.f32 %v1874_v61, %v2414_v21 }
 0x1ca   : > { %v1129_v63 = vpop.f32.mrf.mxu1 }
 0x1cb   : > { %1369 = vst [vmem:[%s2417_s25 + $0xa8] sm:$0xff] %v1135_v62  ;;  %v1130_v0 = vadd.f32 %v2414_v21, %v1129_v63 }
 0x1cc   : > { %v1877_v1 = vpop.f32.mrf.mxu1 }
 0x1cd   : > { %1368 = vst [vmem:[%s2417_s25 + $0xa0] sm:$0xff] %v1130_v0  ;;  %v1145_v2 = vadd.f32 %v1877_v1, %v2414_v21 }
 0x1ce   : > { %v1139_v3 = vpop.f32.mrf.mxu1 }
 0x1cf   : > { %1371 = vst [vmem:[%s2417_s25 + $0xb8] sm:$0xff] %v1145_v2  ;;  %v1140_v4 = vadd.f32 %v2414_v21, %v1139_v3 }
 0x1d0   : > { %v1880_v5 = vpop.f32.mrf.mxu1 }
 0x1d1   : > { %1370 = vst [vmem:[%s2417_s25 + $0xb0] sm:$0xff] %v1140_v4  ;;  %v1155_v6 = vadd.f32 %v1880_v5, %v2414_v21 }
 0x1d2   : > { %v1149_v7 = vpop.f32.mrf.mxu1 }
 0x1d3   : > { %1373 = vst [vmem:[%s2417_s25 + $0xc8] sm:$0xff] %v1155_v6  ;;  %v1150_v8 = vadd.f32 %v2414_v21, %v1149_v7 }
 0x1d4   : > { %v1883_v9 = vpop.f32.mrf.mxu1 }
 0x1d5   : > { %1372 = vst [vmem:[%s2417_s25 + $0xc0] sm:$0xff] %v1150_v8  ;;  %v1165_v10 = vadd.f32 %v1883_v9, %v2414_v21 }
 0x1d6   : > { %v1159_v11 = vpop.f32.mrf.mxu1 }
 0x1d7   : > { %1375 = vst [vmem:[%s2417_s25 + $0xd8] sm:$0xff] %v1165_v10  ;;  %v1160_v12 = vadd.f32 %v2414_v21, %v1159_v11 }
 0x1d8   : > { %v1886_v13 = vpop.f32.mrf.mxu1 }
 0x1d9   : > { %1374 = vst [vmem:[%s2417_s25 + $0xd0] sm:$0xff] %v1160_v12  ;;  %v1175_v14 = vadd.f32 %v1886_v13, %v2414_v21 }
 0x1da   : > { %v1169_v15 = vpop.f32.mrf.mxu1 }
 0x1db   : > { %1377 = vst [vmem:[%s2417_s25 + $0xe8] sm:$0xff] %v1175_v14  ;;  %v1170_v16 = vadd.f32 %v2414_v21, %v1169_v15 }
 0x1dc   : > { %v1889_v18 = vpop.f32.mrf.mxu1 }
 0x1dd   : > { %1376 = vst [vmem:[%s2417_s25 + $0xe0] sm:$0xff] %v1170_v16  ;;  %v1185_v19 = vadd.f32 %v1889_v18, %v2414_v21 }
 0x1de   : > { %v1179_v20 = vpop.f32.mrf.mxu1 }
 0x1df   : > { %1379 = vst [vmem:[%s2417_s25 + $0xf8] sm:$0xff] %v1185_v19  ;;  %v1180_v22 = vadd.f32 %v2414_v21, %v1179_v20 }
 0x1e0   : > { %v1892_v23 = vpop.f32.mrf.mxu1 }
 0x1e1   : > { %1378 = vst [vmem:[%s2417_s25 + $0xf0] sm:$0xff] %v1180_v22  ;;  %v1195_v24 = vadd.f32 %v1892_v23, %v2414_v21 }
 0x1e2   : > { %v1189_v17 = vpop.f32.mrf.mxu1 }
 0x1e3   : > { %1381 = vst [vmem:[%s2417_s25 + $0x108] sm:$0xff] %v1195_v24  ;;  %v1190_v25 = vadd.f32 %v2414_v21, %v1189_v17 }
 0x1e4   : > { %v1895_v26 = vpop.f32.mrf.mxu1 }
 0x1e5   : > { %1380 = vst [vmem:[%s2417_s25 + $0x100] sm:$0xff] %v1190_v25  ;;  %v1205_v27 = vadd.f32 %v1895_v26, %v2414_v21 }
 0x1e6   : > { %v1199_v28 = vpop.f32.mrf.mxu1 }
 0x1e7   : > { %1383 = vst [vmem:[%s2417_s25 + $0x118] sm:$0xff] %v1205_v27  ;;  %v1200_v29 = vadd.f32 %v2414_v21, %v1199_v28 }
 0x1e8   : > { %v1898_v30 = vpop.f32.mrf.mxu1 }
 0x1e9   : > { %1382 = vst [vmem:[%s2417_s25 + $0x110] sm:$0xff] %v1200_v29  ;;  %v1215_v31 = vadd.f32 %v1898_v30, %v2414_v21 }
 0x1ea   : > { %v1209_v32 = vpop.f32.mrf.mxu1 }
 0x1eb   : > { %1385 = vst [vmem:[%s2417_s25 + $0x128] sm:$0xff] %v1215_v31  ;;  %v1210_v33 = vadd.f32 %v2414_v21, %v1209_v32 }
 0x1ec   : > { %v1901_v34 = vpop.f32.mrf.mxu1 }
 0x1ed   : > { %1384 = vst [vmem:[%s2417_s25 + $0x120] sm:$0xff] %v1210_v33  ;;  %v1225_v35 = vadd.f32 %v1901_v34, %v2414_v21 }
 0x1ee   : > { %v1219_v36 = vpop.f32.mrf.mxu1 }
 0x1ef   : > { %1387 = vst [vmem:[%s2417_s25 + $0x138] sm:$0xff] %v1225_v35  ;;  %v1220_v37 = vadd.f32 %v2414_v21, %v1219_v36 }
 0x1f0   : > { %v1904_v38 = vpop.f32.mrf.mxu1 }
 0x1f1   : > { %1386 = vst [vmem:[%s2417_s25 + $0x130] sm:$0xff] %v1220_v37  ;;  %v1235_v39 = vadd.f32 %v1904_v38, %v2414_v21 }
 0x1f2   : > { %v1229_v40 = vpop.f32.mrf.mxu1 }
 0x1f3   : > { %1389 = vst [vmem:[%s2417_s25 + $0x148] sm:$0xff] %v1235_v39  ;;  %v1230_v41 = vadd.f32 %v2414_v21, %v1229_v40 }
 0x1f4   : > { %v1907_v42 = vpop.f32.mrf.mxu1 }
 0x1f5   : > { %1388 = vst [vmem:[%s2417_s25 + $0x140] sm:$0xff] %v1230_v41  ;;  %v1245_v43 = vadd.f32 %v1907_v42, %v2414_v21 }
 0x1f6   : > { %v1239_v44 = vpop.f32.mrf.mxu1 }
 0x1f7   : > { %1391 = vst [vmem:[%s2417_s25 + $0x158] sm:$0xff] %v1245_v43  ;;  %v1240_v45 = vadd.f32 %v2414_v21, %v1239_v44 }
 0x1f8   : > { %v1910_v46 = vpop.f32.mrf.mxu1 }
 0x1f9   : > { %1390 = vst [vmem:[%s2417_s25 + $0x150] sm:$0xff] %v1240_v45  ;;  %v1255_v47 = vadd.f32 %v1910_v46, %v2414_v21 }
 0x1fa   : > { %v1249_v48 = vpop.f32.mrf.mxu1 }
 0x1fb   : > { %1393 = vst [vmem:[%s2417_s25 + $0x168] sm:$0xff] %v1255_v47  ;;  %v1250_v49 = vadd.f32 %v2414_v21, %v1249_v48 }
 0x1fc   : > { %v1913_v50 = vpop.f32.mrf.mxu1 }
 0x1fd   : > { %1392 = vst [vmem:[%s2417_s25 + $0x160] sm:$0xff] %v1250_v49  ;;  %v1265_v51 = vadd.f32 %v1913_v50, %v2414_v21 }
 0x1fe   : > { %v1259_v52 = vpop.f32.mrf.mxu1 }
 0x1ff   : > { %1395 = vst [vmem:[%s2417_s25 + $0x178] sm:$0xff] %v1265_v51  ;;  %v1260_v53 = vadd.f32 %v2414_v21, %v1259_v52 }
 0x200   : > { %v1916_v54 = vpop.f32.mrf.mxu1 }
 0x201   : > { %1394 = vst [vmem:[%s2417_s25 + $0x170] sm:$0xff] %v1260_v53  ;;  %v1275_v55 = vadd.f32 %v1916_v54, %v2414_v21 }
 0x202   : > { %v1269_v56 = vpop.f32.mrf.mxu1 }
 0x203   : > { %1397 = vst [vmem:[%s2417_s25 + $0x188] sm:$0xff] %v1275_v55  ;;  %v1270_v57 = vadd.f32 %v2414_v21, %v1269_v56 }
 0x204   : > { %v1919_v58 = vpop.f32.mrf.mxu1 }
 0x205   : > { %1396 = vst [vmem:[%s2417_s25 + $0x180] sm:$0xff] %v1270_v57  ;;  %v1285_v59 = vadd.f32 %v1919_v58, %v2414_v21 }
 0x206   : > { %v1279_v60 = vpop.f32.mrf.mxu1 }
 0x207   : > { %1399 = vst [vmem:[%s2417_s25 + $0x198] sm:$0xff] %v1285_v59  ;;  %v1280_v61 = vadd.f32 %v2414_v21, %v1279_v60 }
 0x208   : > { %v1922_v62 = vpop.f32.mrf.mxu1 }
 0x209   : > { %1398 = vst [vmem:[%s2417_s25 + $0x190] sm:$0xff] %v1280_v61  ;;  %v1295_v63 = vadd.f32 %v1922_v62, %v2414_v21 }
 0x20a   : > { %v1289_v0 = vpop.f32.mrf.mxu1 }
 0x20b   : > { %1401 = vst [vmem:[%s2417_s25 + $0x1a8] sm:$0xff] %v1295_v63  ;;  %v1290_v1 = vadd.f32 %v2414_v21, %v1289_v0 }
 0x20c   : > { %v1925_v2 = vpop.f32.mrf.mxu1 }
 0x20d   : > { %1400 = vst [vmem:[%s2417_s25 + $0x1a0] sm:$0xff] %v1290_v1  ;;  %v1305_v3 = vadd.f32 %v1925_v2, %v2414_v21 }
 0x20e   : > { %v1299_v4 = vpop.f32.mrf.mxu1 }
 0x20f   : > { %1403 = vst [vmem:[%s2417_s25 + $0x1b8] sm:$0xff] %v1305_v3  ;;  %v1300_v5 = vadd.f32 %v2414_v21, %v1299_v4 }
 0x210   : > { %v1928_v6 = vpop.f32.mrf.mxu1 }
 0x211   : > { %1402 = vst [vmem:[%s2417_s25 + $0x1b0] sm:$0xff] %v1300_v5  ;;  %v1315_v7 = vadd.f32 %v1928_v6, %v2414_v21 }
 0x212   : > { %v1309_v8 = vpop.f32.mrf.mxu1 }
 0x213   : > { %1405 = vst [vmem:[%s2417_s25 + $0x1c8] sm:$0xff] %v1315_v7  ;;  %v1310_v9 = vadd.f32 %v2414_v21, %v1309_v8 }
 0x214   : > { %v1931_v10 = vpop.f32.mrf.mxu1 }
 0x215   : > { %1404 = vst [vmem:[%s2417_s25 + $0x1c0] sm:$0xff] %v1310_v9  ;;  %v1325_v11 = vadd.f32 %v1931_v10, %v2414_v21 }
 0x216   : > { %v1319_v12 = vpop.f32.mrf.mxu1 }
 0x217   : > { %1407 = vst [vmem:[%s2417_s25 + $0x1d8] sm:$0xff] %v1325_v11  ;;  %v1320_v13 = vadd.f32 %v2414_v21, %v1319_v12 }
 0x218   : > { %v1934_v14 = vpop.f32.mrf.mxu1 }
 0x219   : > { %1406 = vst [vmem:[%s2417_s25 + $0x1d0] sm:$0xff] %v1320_v13  ;;  %v1335_v15 = vadd.f32 %v1934_v14, %v2414_v21 }
 0x21a   : > { %v1329_v16 = vpop.f32.mrf.mxu1 }
 0x21b   : > { %1409 = vst [vmem:[%s2417_s25 + $0x1e8] sm:$0xff] %v1335_v15  ;;  %v1330_v18 = vadd.f32 %v2414_v21, %v1329_v16 }
 0x21c   : > { %v1937_v19 = vpop.f32.mrf.mxu1 }
 0x21d   : > { %1408 = vst [vmem:[%s2417_s25 + $0x1e0] sm:$0xff] %v1330_v18  ;;  %v1345_v20 = vadd.f32 %v1937_v19, %v2414_v21 }
 0x21e   : > { %v1339_v22 = vpop.f32.mrf.mxu1 }
 0x21f   : > { %1411 = vst [vmem:[%s2417_s25 + $0x1f8] sm:$0xff] %v1345_v20  ;;  %v1340_v23 = vadd.f32 %v2414_v21, %v1339_v22 }
 0x221   : > { %1410 = vst [vmem:[%s2417_s25 + $0x1f0] sm:$0xff] %v1340_v23 }
 0x222   : > { %2024 = shalt.err (!%p2021_p3)
}
 0x223   : > { %s2025_s14 = scalar_lea.hbm %s2548_s8, 8192  ;;  %s2029_s16 = scalar_lea.hbm %s2602_s5, 16384 }
 0x224   : > { %p2026_p4 = scmp.ne.s32.totalorder %s2548_s8, %s2025_s14  ;;  %p2030_p9 = scmp.lt.s32.totalorder %s2548_s8, %s2602_s5 }
 0x225   : > { %p2031_p10 = scmp.lt.s32.totalorder %s2029_s16, %s2025_s14 }
 0x226   : > { %p2027_p7 = pnand %p2026_p4, %p2144_p5 }
 0x227   : > { %p2032_p11 = por %p2031_p10, %p2030_p9 }
 0x228   : > { %p2028_p8 = pneg %p2027_p7 }
 0x22a   : > { %p2033_p12 = pnand %p2032_p11, %p2028_p8 }
 0x22c   : > { %2036 = shalt.err (!%p2033_p12)
}
 0x22d   : > { %s2074_s25 = smov 128   ;;  %s2075_s26 = smov 8  }
 0x22e   : > { %1970 = dma.vmem_to_hbm [thread:$0]  (%p2144_p5), %s2550_s30, 8192, %s2548_s8, %s2557_s22, %s2074_s25, %s2074_s25, %s2075_s26  }
 0x22f PF: > { %p1976_p13 = scmp.ge.s32.totalorder %s2071_s21, 2  ;;  %s1441_s6 = sand.u32 1, %s2059_s18  }
 0x230   : > { %s1442_s7 = scalar_lea.sflag [#allocation3], %s1441_s6 }
 0x231   : > { %p1973_p0 = pnand %p1976_p13, %p2148_p6 }
 0x233   : > { %p1974_p1 = pneg %p1973_p0 }
 0x235   : > { %2054 = dma.done.wait (%p1974_p1), %s1442_s7, 8192  }
 0x236   : > { %2056 = vsyncadd (%p1974_p1), %s1442_s7, 4294959104  ;;  %p15_p2 = scmp.ge.s32.totalorder %s2131_s24, 4   ;;  %s2605_s18 = smov %s2063_s19 }
 0x237   : > { %s2606_s19 = smov %s2067_s20  ;;  %s2607_s20 = smov %s2142_s27 }
 0x238   : > { %s2608_s21 = smov %s2131_s24  ;;  %17 = sbr.rel (!%p15_p2) target bundleno = 3 (0x3), region = 75 }
 0x23d   :  { %1447 = vsyncpa [#allocation3], 1 }
 0x23e   :  { %1449 = vsyncpa [#allocation3 + $0x1], 1 }

</bundles_post_ra>
